<compile_context>
chip_gen: v7x
topology: tpu7x:2x2x1
jax: 0.10.0
libtpu: 0.0.40
codegen_flags: <defaults>
</compile_context>

<pallas_src>
import math
import functools

import jax
import jax.numpy as jnp
from jax import lax
from jax.experimental import pallas as pl
from jax.experimental.pallas import tpu as pltpu

BN_EPS = 1e-5      # nn.BatchNorm1d default eps
ASP_EPS = 1e-12    # self.eps in AttentiveStatisticsPooling


def _asp_kernel(x_ref, w1_ref, b1_ref, bns_ref, bnb_ref, w2_ref, b2_ref,
                wm_ref, ws_ref, bfc_ref, out_ref, *, l_true, bt):
    """One grid step: a (bt, C, Lp) tile of x -> (bt, C, Lp) tile of out."""
    Lp = x_ref.shape[-1]
    need_mask = l_true < Lp
    if need_mask:
        lane = lax.broadcasted_iota(jnp.int32, (1, Lp), 1)
        valid = lane < l_true                              # (1, Lp) bool

    # Weights / fused-BN params (weights may be bf16; elementwise params are f32).
    w1 = w1_ref[...]                                       # (A, C)
    w2 = w2_ref[...]                                       # (C, A)
    b1 = b1_ref[...]                                       # (A, 1) f32
    b2 = b2_ref[...]                                       # (C, 1) f32
    bns = bns_ref[...]                                     # (A, 1) f32  BN scale
    bnb = bnb_ref[...]                                     # (A, 1) f32  BN shift

    means = []
    stds = []
    for b in range(bt):                                    # unrolled; bt is small
        xb = x_ref[b]                                      # (C, Lp) compute dtype
        xf = xb.astype(jnp.float32)                        # f32 for stats/elementwise

        # --- TDNNBlock: 1x1 conv (C->A) + ReLU + folded eval-mode BatchNorm ---
        h = jnp.dot(w1, xb, preferred_element_type=jnp.float32)        # (A, Lp) f32
        h = jnp.maximum(h + b1, 0.0)
        h = h * bns + bnb

        # --- tanh + 1x1 conv (A -> C) ---
        h = jnp.tanh(h)
        a0 = jnp.dot(w2, h.astype(w2.dtype),
                     preferred_element_type=jnp.float32) + b2          # (C, Lp) f32

        # --- masked softmax over L ---
        if need_mask:
            a0 = jnp.where(valid, a0, jnp.float32(-1e30))
        m = jnp.max(a0, axis=-1, keepdims=True)
        e = jnp.exp(a0 - m)
        if need_mask:
            e = jnp.where(valid, e, 0.0)
        denom = jnp.sum(e, axis=-1, keepdims=True)
        attn = e * pl.reciprocal(denom, approx=True)                   # (C, Lp)

        # --- attentive statistics (f32) ---
        mean = jnp.sum(attn * xf, axis=-1, keepdims=True)              # (C, 1)
        d = xf - mean
        var = jnp.sum(attn * d * d, axis=-1, keepdims=True)            # (C, 1)
        std = jnp.sqrt(jnp.maximum(var, ASP_EPS))
        means.append(mean)
        stds.append(std)

    # --- fc(cat(mean, std)) batched over the tile: (C,C)@(C,bt) twice ---
    mean_mat = means[0] if bt == 1 else jnp.concatenate(means, axis=1)  # (C, bt)
    std_mat = stds[0] if bt == 1 else jnp.concatenate(stds, axis=1)     # (C, bt)
    rf = (jnp.dot(wm_ref[...], mean_mat.astype(wm_ref.dtype),
                  preferred_element_type=jnp.float32)
          + jnp.dot(ws_ref[...], std_mat.astype(ws_ref.dtype),
                    preferred_element_type=jnp.float32)
          + bfc_ref[...])                                               # (C, bt) f32

    # --- exact GELU (erf form, matches nn.GELU default) ---
    gw = 0.5 * rf * (1.0 + lax.erf(rf * jnp.float32(1.0 / math.sqrt(2.0))))

    # --- weight * x, lane-dense (Lp multiple of 128) stores ---
    for b in range(bt):
        xf = x_ref[b].astype(jnp.float32)
        out_ref[b] = (gw[:, b:b + 1] * xf).astype(out_ref.dtype)


def attentive_statistics_pooling(x, params, *, compute_dtype=jnp.float32,
                                 block_batch=8):
    """x: [N, C, L] float32; params: dict of weights. Returns [N, C, L] in x.dtype.

    compute_dtype: dtype used for x and the matmul weight matrices (f32 or bf16).
    All softmax / statistics / GELU math stays in f32 inside the kernel.
    """
    N, C, L = x.shape
    A = params["w1"].shape[0]

    # Lane-dense length: pad L up to a multiple of 128.
    Lp = max(128, ((L + 127) // 128) * 128)

    # Batch-tile size: amortize per-grid-step overhead, but keep >= 2 grid steps
    # when possible so v7x's 2 TensorCores both get work.
    bt = max(1, min(block_batch, N))
    if N > 1 and -(-N // bt) < 2:
        bt = -(-N // 2)
    n_pad = -(-N // bt) * bt

    xk = x.astype(compute_dtype)
    if (n_pad, Lp) != (N, L):
        xk = jnp.pad(xk, ((0, n_pad - N), (0, 0), (0, Lp - L)))

    # Fold eval-mode BatchNorm into scale/shift (host side, f32).
    bn_scale = params["gamma"] * lax.rsqrt(params["rv"] + BN_EPS)       # (A, 1)
    bn_shift = params["beta"] - params["rm"] * bn_scale                 # (A, 1)

    # Matmul weights in compute dtype; biases / BN affine stay f32.
    w1 = params["w1"].astype(compute_dtype)       # (A, C)
    w2 = params["w2"].astype(compute_dtype)       # (C, A)
    wfc_m = params["wfc_m"].astype(compute_dtype)  # (C, C)
    wfc_s = params["wfc_s"].astype(compute_dtype)  # (C, C)
    b1 = params["b1"].astype(jnp.float32)
    b2 = params["b2"].astype(jnp.float32)
    bfc = params["bfc"].astype(jnp.float32)

    def full2d(shape):
        return pl.BlockSpec(shape, lambda n: (0, 0))

    in_specs = [
        pl.BlockSpec((bt, C, Lp), lambda n: (n, 0, 0)),   # x tile
        full2d(w1.shape), full2d(b1.shape),
        full2d(bn_scale.shape), full2d(bn_shift.shape),
        full2d(w2.shape), full2d(b2.shape),
        full2d(wfc_m.shape), full2d(wfc_s.shape), full2d(bfc.shape),
    ]
    out_spec = pl.BlockSpec((bt, C, Lp), lambda n: (n, 0, 0))

    # Explicit VMEM budget (double-buffered x/out tiles + weights + intermediates).
    cd_bytes = jnp.dtype(compute_dtype).itemsize
    io_bytes = bt * C * Lp * (cd_bytes + jnp.dtype(x.dtype).itemsize)
    w_bytes = ((w1.size + w2.size + wfc_m.size + wfc_s.size) * cd_bytes
               + (b1.size + b2.size + bfc.size + bn_scale.size + bn_shift.size) * 4)
    tmp_bytes = bt * (A + 4 * C) * Lp * 4
    est = 2 * io_bytes + 2 * w_bytes + tmp_bytes + (4 << 20)
    vmem_limit = int(est) if est > (32 << 20) else None

    kernel = functools.partial(_asp_kernel, l_true=L, bt=bt)

    out = pl.pallas_call(
        kernel,
        out_shape=jax.ShapeDtypeStruct((n_pad, C, Lp), x.dtype),
        grid_spec=pltpu.PrefetchScalarGridSpec(
            num_scalar_prefetch=0,
            grid=(n_pad // bt,),
            in_specs=in_specs,
            out_specs=out_spec,
        ),
        compiler_params=pltpu.CompilerParams(
            dimension_semantics=("parallel",),
            vmem_limit_bytes=vmem_limit),
    )(xk, w1, b1, bn_scale, bn_shift, w2, b2, wfc_m, wfc_s, bfc)

    return out[:N, :, :L]


def _reference(x, p):
    """Pure-JAX f32 reference of the same forward pass (unfolded BN)."""
    h = jnp.einsum("ac,ncl->nal", p["w1"], x) + p["b1"][None]           # (N, A, L)
    h = jnp.maximum(h, 0.0)
    h = (h - p["rm"][None]) / jnp.sqrt(p["rv"][None] + BN_EPS) * p["gamma"][None] + p["beta"][None]
    h = jnp.tanh(h)
    a0 = jnp.einsum("ca,nal->ncl", p["w2"], h) + p["b2"][None]          # (N, C, L)
    attn = jax.nn.softmax(a0, axis=2)
    mean = jnp.sum(attn * x, axis=2)                                    # (N, C)
    std = jnp.sqrt(jnp.maximum(jnp.sum(attn * (x - mean[:, :, None]) ** 2, axis=2), ASP_EPS))
    rf = mean @ p["wfc_m"].T + std @ p["wfc_s"].T + p["bfc"][:, 0][None]
    w = 0.5 * rf * (1.0 + lax.erf(rf / math.sqrt(2.0)))
    return w[:, :, None] * x


if __name__ == "__main__":
    C, L = 8, 64                # channels, length (L < 128 -> exercises lane padding/mask)
    A = 16                      # attention_channels (small synthetic size)

    key = jax.random.PRNGKey(0)
    ks = jax.random.split(key, 13)
    params = {
        "w1":    0.2 * jax.random.normal(ks[0], (A, C), jnp.float32),
        "b1":    0.1 * jax.random.normal(ks[1], (A, 1), jnp.float32),
        "gamma": 1.0 + 0.1 * jax.random.normal(ks[2], (A, 1), jnp.float32),
        "beta":  0.1 * jax.random.normal(ks[3], (A, 1), jnp.float32),
        "rm":    0.1 * jax.random.normal(ks[4], (A, 1), jnp.float32),
        "rv":    1.0 + 0.1 * jax.random.uniform(ks[5], (A, 1), jnp.float32),
        "w2":    0.2 * jax.random.normal(ks[6], (C, A), jnp.float32),
        "b2":    0.1 * jax.random.normal(ks[7], (C, 1), jnp.float32),
        # nn.Linear(2C, C) weight split into mean-half / std-half
        "wfc_m": 0.2 * jax.random.normal(ks[8], (C, C), jnp.float32),
        "wfc_s": 0.2 * jax.random.normal(ks[9], (C, C), jnp.float32),
        "bfc":   0.1 * jax.random.normal(ks[10], (C, 1), jnp.float32),
    }

    # --- run 1: N=2, f32 compute path ---
    x = jax.random.normal(ks[11], (2, C, L), jnp.float32)
    ref = _reference(x, params)
    out = jax.block_until_ready(attentive_statistics_pooling(x, params))
    assert out.shape == x.shape
    err = float(jnp.max(jnp.abs(out - ref)))
    assert jnp.allclose(out, ref, atol=2e-3, rtol=2e-3), err

    # --- run 2: N=2, bf16 matmul/x path (stats still f32) ---
    out_bf = jax.block_until_ready(
        attentive_statistics_pooling(x, params, compute_dtype=jnp.bfloat16))
    err_bf = float(jnp.max(jnp.abs(out_bf - ref)))
    assert jnp.allclose(out_bf, ref, atol=5e-2, rtol=5e-2), err_bf

    # --- run 3: N=5 with batch tiling (bt=2) -> exercises batch packing + padding ---
    x2 = jax.random.normal(ks[12], (5, C, L), jnp.float32)
    ref2 = _reference(x2, params)
    out2 = jax.block_until_ready(
        attentive_statistics_pooling(x2, params, block_batch=2))
    err2 = float(jnp.max(jnp.abs(out2 - ref2)))
    assert out2.shape == x2.shape
    assert jnp.allclose(out2, ref2, atol=2e-3, rtol=2e-3), err2

    print("KERNEL_OK")
</pallas_src>

<mosaic_0001>
module attributes {stable_mosaic.version = 11 : i64} {
  func.func @_asp_kernel(%arg0: i32, %arg1: memref<1x8x128xf32, #tpu.memory_space<vmem>>, %arg2: memref<16x8xf32, #tpu.memory_space<vmem>>, %arg3: memref<16x1xf32, #tpu.memory_space<vmem>>, %arg4: memref<16x1xf32, #tpu.memory_space<vmem>>, %arg5: memref<16x1xf32, #tpu.memory_space<vmem>>, %arg6: memref<8x16xf32, #tpu.memory_space<vmem>>, %arg7: memref<8x1xf32, #tpu.memory_space<vmem>>, %arg8: memref<8x8xf32, #tpu.memory_space<vmem>>, %arg9: memref<8x8xf32, #tpu.memory_space<vmem>>, %arg10: memref<8x1xf32, #tpu.memory_space<vmem>>, %arg11: memref<1x8x128xf32, #tpu.memory_space<vmem>>) attributes {dimension_semantics = [#tpu.dimension_semantics<parallel>], iteration_bounds = array<i64: 2>, scalar_prefetch = 0 : i64, scratch_operands = 0 : i64, tpu.core_type = #tpu.core_type<tc>, window_params = [{transform_indices = @transform_0, window_bounds = array<i64: 1, 8, 128>}, {pipeline_mode = #tpu.pipeline_mode<synchronous>, transform_indices = @transform_1, window_bounds = array<i64: 16, 8>}, {pipeline_mode = #tpu.pipeline_mode<synchronous>, transform_indices = @transform_2, window_bounds = array<i64: 16, 1>}, {pipeline_mode = #tpu.pipeline_mode<synchronous>, transform_indices = @transform_3, window_bounds = array<i64: 16, 1>}, {pipeline_mode = #tpu.pipeline_mode<synchronous>, transform_indices = @transform_4, window_bounds = array<i64: 16, 1>}, {pipeline_mode = #tpu.pipeline_mode<synchronous>, transform_indices = @transform_5, window_bounds = array<i64: 8, 16>}, {pipeline_mode = #tpu.pipeline_mode<synchronous>, transform_indices = @transform_6, window_bounds = array<i64: 8, 1>}, {pipeline_mode = #tpu.pipeline_mode<synchronous>, transform_indices = @transform_7, window_bounds = array<i64: 8, 8>}, {pipeline_mode = #tpu.pipeline_mode<synchronous>, transform_indices = @transform_8, window_bounds = array<i64: 8, 8>}, {pipeline_mode = #tpu.pipeline_mode<synchronous>, transform_indices = @transform_9, window_bounds = array<i64: 8, 1>}, {transform_indices = @transform_10, window_bounds = array<i64: 1, 8, 128>}]} {
    %0 = tpu.iota {dimensions = array<i32: 1>} : vector<1x128xi32>
    %c64_i32 = arith.constant 64 : i32
    %1 = vector.broadcast %c64_i32 : i32 to vector<1x128xi32>
    %2 = arith.cmpi slt, %0, %1 : vector<1x128xi32>
    %c0 = arith.constant 0 : index
    %c0_0 = arith.constant 0 : index
    %3 = vector.load %arg2[%c0, %c0_0] : memref<16x8xf32, #tpu.memory_space<vmem>>, vector<16x8xf32>
    %c0_1 = arith.constant 0 : index
    %c0_2 = arith.constant 0 : index
    %4 = vector.load %arg6[%c0_1, %c0_2] : memref<8x16xf32, #tpu.memory_space<vmem>>, vector<8x16xf32>
    %c0_3 = arith.constant 0 : index
    %c0_4 = arith.constant 0 : index
    %5 = vector.load %arg3[%c0_3, %c0_4] : memref<16x1xf32, #tpu.memory_space<vmem>>, vector<16x1xf32>
    %c0_5 = arith.constant 0 : index
    %c0_6 = arith.constant 0 : index
    %6 = vector.load %arg7[%c0_5, %c0_6] : memref<8x1xf32, #tpu.memory_space<vmem>>, vector<8x1xf32>
    %c0_7 = arith.constant 0 : index
    %c0_8 = arith.constant 0 : index
    %7 = vector.load %arg4[%c0_7, %c0_8] : memref<16x1xf32, #tpu.memory_space<vmem>>, vector<16x1xf32>
    %c0_9 = arith.constant 0 : index
    %c0_10 = arith.constant 0 : index
    %8 = vector.load %arg5[%c0_9, %c0_10] : memref<16x1xf32, #tpu.memory_space<vmem>>, vector<16x1xf32>
    %c0_11 = arith.constant 0 : index
    %c0_12 = arith.constant 0 : index
    %c0_13 = arith.constant 0 : index
    %9 = vector.load %arg1[%c0_11, %c0_12, %c0_13] : memref<1x8x128xf32, #tpu.memory_space<vmem>>, vector<1x8x128xf32>
    %10 = vector.shape_cast %9 : vector<1x8x128xf32> to vector<8x128xf32>
    %cst = arith.constant dense<0.000000e+00> : vector<16x128xf32>
    %11 = tpu.matmul %3, %10, %cst {dimension_numbers = #tpu.dot_dimension_numbers<[1], [0], [0], [1], [0, 0, 1, 1], [], []>} : vector<16x8xf32>, vector<8x128xf32>, vector<16x128xf32> -> vector<16x128xf32>
    %12 = vector.broadcast %5 : vector<16x1xf32> to vector<16x128xf32>
    %13 = arith.addf %11, %12 : vector<16x128xf32>
    %cst_14 = arith.constant 0.000000e+00 : f32
    %14 = vector.broadcast %cst_14 : f32 to vector<16x128xf32>
    %15 = arith.maximumf %13, %14 : vector<16x128xf32>
    %16 = vector.broadcast %7 : vector<16x1xf32> to vector<16x128xf32>
    %17 = arith.mulf %15, %16 : vector<16x128xf32>
    %18 = vector.broadcast %8 : vector<16x1xf32> to vector<16x128xf32>
    %19 = arith.addf %17, %18 : vector<16x128xf32>
    %20 = math.tanh %19 : vector<16x128xf32>
    %cst_15 = arith.constant dense<0.000000e+00> : vector<8x128xf32>
    %21 = tpu.matmul %4, %20, %cst_15 {dimension_numbers = #tpu.dot_dimension_numbers<[1], [0], [0], [1], [0, 0, 1, 1], [], []>} : vector<8x16xf32>, vector<16x128xf32>, vector<8x128xf32> -> vector<8x128xf32>
    %22 = vector.broadcast %6 : vector<8x1xf32> to vector<8x128xf32>
    %23 = arith.addf %21, %22 : vector<8x128xf32>
    %cst_16 = arith.constant -1.000000e+30 : f32
    %24 = vector.shape_cast %2 : vector<1x128xi1> to vector<1x128xi1>
    %25 = vector.broadcast %24 : vector<1x128xi1> to vector<8x128xi1>
    %26 = vector.broadcast %cst_16 : f32 to vector<8x128xf32>
    %27 = arith.select %25, %23, %26 : vector<8x128xi1>, vector<8x128xf32>
    %cst_17 = arith.constant dense<0xFF800000> : vector<8xf32>
    %28 = vector.multi_reduction <maximumf>, %27, %cst_17 [1] : vector<8x128xf32> to vector<8xf32>
    %29 = vector.shape_cast %28 : vector<8xf32> to vector<8x1xf32>
    %30 = vector.broadcast %29 : vector<8x1xf32> to vector<8x128xf32>
    %31 = arith.subf %27, %30 : vector<8x128xf32>
    %32 = math.exp %31 : vector<8x128xf32>
    %cst_18 = arith.constant 0.000000e+00 : f32
    %33 = vector.shape_cast %2 : vector<1x128xi1> to vector<1x128xi1>
    %34 = vector.broadcast %33 : vector<1x128xi1> to vector<8x128xi1>
    %35 = vector.broadcast %cst_18 : f32 to vector<8x128xf32>
    %36 = arith.select %34, %32, %35 : vector<8x128xi1>, vector<8x128xf32>
    %cst_19 = arith.constant dense<0.000000e+00> : vector<8xf32>
    %37 = vector.multi_reduction <add>, %36, %cst_19 [1] : vector<8x128xf32> to vector<8xf32>
    %38 = vector.shape_cast %37 : vector<8xf32> to vector<8x1xf32>
    %39 = tpu.reciprocal %38 {approx = true} : vector<8x1xf32> -> vector<8x1xf32>
    %40 = vector.broadcast %39 : vector<8x1xf32> to vector<8x128xf32>
    %41 = arith.mulf %36, %40 : vector<8x128xf32>
    %42 = arith.mulf %41, %10 : vector<8x128xf32>
    %cst_20 = arith.constant dense<0.000000e+00> : vector<8xf32>
    %43 = vector.multi_reduction <add>, %42, %cst_20 [1] : vector<8x128xf32> to vector<8xf32>
    %44 = vector.shape_cast %43 : vector<8xf32> to vector<8x1xf32>
    %45 = vector.broadcast %44 : vector<8x1xf32> to vector<8x128xf32>
    %46 = arith.subf %10, %45 : vector<8x128xf32>
    %47 = arith.mulf %41, %46 : vector<8x128xf32>
    %48 = arith.mulf %47, %46 : vector<8x128xf32>
    %cst_21 = arith.constant dense<0.000000e+00> : vector<8xf32>
    %49 = vector.multi_reduction <add>, %48, %cst_21 [1] : vector<8x128xf32> to vector<8xf32>
    %50 = vector.shape_cast %49 : vector<8xf32> to vector<8x1xf32>
    %cst_22 = arith.constant 9.99999996E-13 : f32
    %51 = vector.broadcast %cst_22 : f32 to vector<8x1xf32>
    %52 = arith.maximumf %50, %51 : vector<8x1xf32>
    %53 = math.sqrt %52 : vector<8x1xf32>
    %c0_23 = arith.constant 0 : index
    %c0_24 = arith.constant 0 : index
    %54 = vector.load %arg8[%c0_23, %c0_24] : memref<8x8xf32, #tpu.memory_space<vmem>>, vector<8x8xf32>
    %cst_25 = arith.constant dense<0.000000e+00> : vector<8x1xf32>
    %55 = tpu.matmul %54, %44, %cst_25 {dimension_numbers = #tpu.dot_dimension_numbers<[1], [0], [0], [1], [0, 0, 1, 1], [], []>} : vector<8x8xf32>, vector<8x1xf32>, vector<8x1xf32> -> vector<8x1xf32>
    %c0_26 = arith.constant 0 : index
    %c0_27 = arith.constant 0 : index
    %56 = vector.load %arg9[%c0_26, %c0_27] : memref<8x8xf32, #tpu.memory_space<vmem>>, vector<8x8xf32>
    %cst_28 = arith.constant dense<0.000000e+00> : vector<8x1xf32>
    %57 = tpu.matmul %56, %53, %cst_28 {dimension_numbers = #tpu.dot_dimension_numbers<[1], [0], [0], [1], [0, 0, 1, 1], [], []>} : vector<8x8xf32>, vector<8x1xf32>, vector<8x1xf32> -> vector<8x1xf32>
    %58 = arith.addf %55, %57 : vector<8x1xf32>
    %c0_29 = arith.constant 0 : index
    %c0_30 = arith.constant 0 : index
    %59 = vector.load %arg10[%c0_29, %c0_30] : memref<8x1xf32, #tpu.memory_space<vmem>>, vector<8x1xf32>
    %60 = arith.addf %58, %59 : vector<8x1xf32>
    %cst_31 = arith.constant 5.000000e-01 : f32
    %61 = vector.broadcast %cst_31 : f32 to vector<8x1xf32>
    %62 = arith.mulf %61, %60 : vector<8x1xf32>
    %cst_32 = arith.constant 0.707106769 : f32
    %63 = vector.broadcast %cst_32 : f32 to vector<8x1xf32>
    %64 = arith.mulf %60, %63 : vector<8x1xf32>
    %65 = math.erf %64 : vector<8x1xf32>
    %cst_33 = arith.constant 1.000000e+00 : f32
    %66 = vector.broadcast %cst_33 : f32 to vector<8x1xf32>
    %67 = arith.addf %66, %65 : vector<8x1xf32>
    %68 = arith.mulf %62, %67 : vector<8x1xf32>
    %c0_34 = arith.constant 0 : index
    %c0_35 = arith.constant 0 : index
    %c0_36 = arith.constant 0 : index
    %69 = vector.load %arg1[%c0_34, %c0_35, %c0_36] : memref<1x8x128xf32, #tpu.memory_space<vmem>>, vector<1x8x128xf32>
    %70 = vector.shape_cast %69 : vector<1x8x128xf32> to vector<8x128xf32>
    %71 = vector.broadcast %68 : vector<8x1xf32> to vector<8x128xf32>
    %72 = arith.mulf %71, %70 : vector<8x128xf32>
    %c0_37 = arith.constant 0 : index
    %c0_38 = arith.constant 0 : index
    %c0_39 = arith.constant 0 : index
    %73 = vector.load %arg11[%c0_37, %c0_38, %c0_39] : memref<1x8x128xf32, #tpu.memory_space<vmem>>, vector<1x8x128xf32>
    %74 = vector.shape_cast %73 : vector<1x8x128xf32> to vector<8x128xf32>
    %75 = vector.shape_cast %72 : vector<8x128xf32> to vector<1x8x128xf32>
    tpu.vector_store %arg11[%c0_37, %c0_38, %c0_39], %75 {strides = array<i32>} : memref<1x8x128xf32, #tpu.memory_space<vmem>>, vector<1x8x128xf32>,
    return
  }
  func.func @transform_0(%arg0: i32) -> (i32, i32, i32) {
    %c0_i32 = arith.constant 0 : i32
    %c0_i32_0 = arith.constant 0 : i32
    %c0_i32_1 = arith.constant 0 : i32
    return %arg0, %c0_i32, %c0_i32_0 : i32, i32, i32
  }
  func.func @transform_1(%arg0: i32) -> (i32, i32) {
    %c0_i32 = arith.constant 0 : i32
    %c0_i32_0 = arith.constant 0 : i32
    %c0_i32_1 = arith.constant 0 : i32
    return %c0_i32, %c0_i32_0 : i32, i32
  }
  func.func @transform_2(%arg0: i32) -> (i32, i32) {
    %c0_i32 = arith.constant 0 : i32
    %c0_i32_0 = arith.constant 0 : i32
    %c0_i32_1 = arith.constant 0 : i32
    return %c0_i32, %c0_i32_0 : i32, i32
  }
  func.func @transform_3(%arg0: i32) -> (i32, i32) {
    %c0_i32 = arith.constant 0 : i32
    %c0_i32_0 = arith.constant 0 : i32
    %c0_i32_1 = arith.constant 0 : i32
    return %c0_i32, %c0_i32_0 : i32, i32
  }
  func.func @transform_4(%arg0: i32) -> (i32, i32) {
    %c0_i32 = arith.constant 0 : i32
    %c0_i32_0 = arith.constant 0 : i32
    %c0_i32_1 = arith.constant 0 : i32
    return %c0_i32, %c0_i32_0 : i32, i32
  }
  func.func @transform_5(%arg0: i32) -> (i32, i32) {
    %c0_i32 = arith.constant 0 : i32
    %c0_i32_0 = arith.constant 0 : i32
    %c0_i32_1 = arith.constant 0 : i32
    return %c0_i32, %c0_i32_0 : i32, i32
  }
  func.func @transform_6(%arg0: i32) -> (i32, i32) {
    %c0_i32 = arith.constant 0 : i32
    %c0_i32_0 = arith.constant 0 : i32
    %c0_i32_1 = arith.constant 0 : i32
    return %c0_i32, %c0_i32_0 : i32, i32
  }
  func.func @transform_7(%arg0: i32) -> (i32, i32) {
    %c0_i32 = arith.constant 0 : i32
    %c0_i32_0 = arith.constant 0 : i32
    %c0_i32_1 = arith.constant 0 : i32
    return %c0_i32, %c0_i32_0 : i32, i32
  }
  func.func @transform_8(%arg0: i32) -> (i32, i32) {
    %c0_i32 = arith.constant 0 : i32
    %c0_i32_0 = arith.constant 0 : i32
    %c0_i32_1 = arith.constant 0 : i32
    return %c0_i32, %c0_i32_0 : i32, i32
  }
  func.func @transform_9(%arg0: i32) -> (i32, i32) {
    %c0_i32 = arith.constant 0 : i32
    %c0_i32_0 = arith.constant 0 : i32
    %c0_i32_1 = arith.constant 0 : i32
    return %c0_i32, %c0_i32_0 : i32, i32
  }
  func.func @transform_10(%arg0: i32) -> (i32, i32, i32) {
    %c0_i32 = arith.constant 0 : i32
    %c0_i32_0 = arith.constant 0 : i32
    %c0_i32_1 = arith.constant 0 : i32
    return %arg0, %c0_i32, %c0_i32_0 : i32, i32, i32
  }
}

</mosaic_0001>

<bundles_post_ra>
// kernel: tpu_custom_call.1
= control target key start
LH: loop header
LB: loop body
LE: loop exit
PB: predicated region body
PF: predicated region fallthrough
CT: control target
= control target key end

     0   :  { %15 = vsyncpa [#allocation3], 0  ;;  %s1216_s0 = inlined_call_operand.vmem [shape: f32[2,8,128], index: 0, kind: input, shape index: {}]   ;;  %s1217_s1 = inlined_call_operand.vmem [shape: f32[16,8], index: 1, kind: input, shape index: {}]   ;;  %s1218_s2 = inlined_call_operand.vmem [shape: f32[16,1], index: 2, kind: input, shape index: {}]   ;;  %s1219_s3 = inlined_call_operand.vmem [shape: f32[16,1], index: 3, kind: input, shape index: {}]   ;;  %s1220_s4 = inlined_call_operand.vmem [shape: f32[16,1], index: 4, kind: input, shape index: {}]   ;;  %s1221_s5 = inlined_call_operand.vmem [shape: f32[8,16], index: 5, kind: input, shape index: {}]   ;;  %s1222_s6 = inlined_call_operand.vmem [shape: f32[8,1], index: 6, kind: input, shape index: {}]   ;;  %s1223_s7 = inlined_call_operand.vmem [shape: f32[8,8], index: 7, kind: input, shape index: {}]   ;;  %s1224_s8 = inlined_call_operand.vmem [shape: f32[8,8], index: 8, kind: input, shape index: {}]   ;;  %s1225_s9 = inlined_call_operand.vmem [shape: f32[8,1], index: 9, kind: input, shape index: {}]   ;;  %s1226_s10 = inlined_call_operand.hbm [shape: f32[2,8,128], index: 10, kind: output, shape index: {}]  }
   0x1   :  { %17 = vsyncpa [#allocation3 + $0x1], 0  ;;  %s1063_s13 = smov 0   ;;  %s1065_s14 = smov 0  }
   0x2   :  { %s1067_s15 = smov 0   ;;  %s1069_s16 = smov 0  }
   0x3 LB: > { %s1084_s17 = sadd.s32 4294967295, %s1001_s16   ;;  %s832_s18 = sadd.s32 4294967294, %s1001_s16   ;;  %s1001_s16 = sphi %s1069_s16, %s1232_s16   ;;  %s997_s15 = sphi %s1067_s15, %s1231_s15   ;;  %s993_s14 = sphi %s1065_s14, %s1230_s14   ;;  %s989_s13 = sphi %s1063_s13, %s1229_s13  }
   0x4   : > { %s1088_s19 = sadd.s32 1, %s1001_s16   ;;  %s245_s20 = sadd.s32 1, %s997_s15 }
   0x5   : > { %s242_s21 = ssub.s32 %s1001_s16, %s1088_s19  ;;  %p255_p0 = scmp.ne.s32.totalorder %s997_s15, %s993_s14 }
   0x6   : > { %p243_p1 = scmp.eq.s32.totalorder %s242_s21, 0  ;;  %p256_p2 = scmp.eq.s32.totalorder %s1084_s17, 1 }
   0x7   : > { %p261_p3 = scmp.ne.s32.totalorder %s993_s14, %s989_s13  ;;  %p262_p4 = scmp.eq.s32.totalorder %s832_s18, 1 }
   0x8   : > { %s1099_s22 = scalar_select %p243_p1, %s997_s15, %s245_s20  }
   0x9   : > { %p1101_p5 = por %p256_p2, %p255_p0  ;;  %p1105_p6 = por %p262_p4, %p261_p3 }
   0xa   : > { %p835_p7 = scmp.ge.s32.totalorder %s1001_s16, 1  ;;  %p314_p8 = scmp.lt.s32.totalorder %s1001_s16, 3 }
   0xc   : > { %p315_p9 = pnand %p835_p7, %p314_p8 }
   0xd   : > { %p351_p10 = scmp.lt.s32.totalorder (!%p315_p9), %s1084_s17, 1  ;;  %v358_v0 = vld [vmem:[%s1217_s1] sm:$0xff] (!%p315_p9)  ;;  %vm379_vm0 = vcmask (!%p315_p9), 64512   ;;  %v1003_v2 = vmov (!%p315_p9), 0   ;;  %v362_v4 = vld [vmem:[%s1218_s2 + $0x8] sm:$0xff] (!%p315_p9)  ;;  %v1004_v11 = vmov (!%p315_p9), 0.0|0.0   ;;  %v355_v33 = vlaneseq (!%p315_p9) }
   0xe   : > { %318 = sbr.rel (%p315_p9) target bundleno = 1480 (0x5c8), region = 60  ;;  %v361_v1 = vld [vmem:[%s1218_s2] sm:$0xff] (!%p315_p9)  ;;  %859 = vmatprep.mubr.msk.f32.mxu0 (!%p315_p9), %vm379_vm0, %v358_v0  ;;  %925 = vset.pattern.permute.xlu0 (!%p315_p9), %v1003_v2  ;;  %v365_v5 = vld [vmem:[%s1219_s3 + $0x8] sm:$0xff] (!%p315_p9)  ;;  %vm1005_vm1 = vmmov (!%p315_p9), 0   ;;  %v1006_v12 = vmov (!%p315_p9), 0.0   ;;  %vm494_vm2 = vcmask (!%p315_p9), 130048  }
   0xf   : > { %v364_v3 = vld [vmem:[%s1219_s3] sm:$0xff] (!%p315_p9)  ;;  %371 = vperm.xlu0 (!%p315_p9), %925, %v361_v1   ;;  %926 = vset.pattern.permute.xlu1 (!%p315_p9), %v1003_v2  ;;  %v359_v7 = vld [vmem:[%s1217_s1 + $0x8] sm:$0xff] (!%p315_p9)  ;;  %v356_v34 = vand.u32 (!%p315_p9), 127, %v355_v33  ;;  %s348_s21 = sand.u32 (!%p315_p9), 1, %s993_s14   ;;  %s844_s25 = sshll.u32 (!%p315_p9), %s1084_s17, 7 }
  0x10   : > { %465 = vperm.xlu1 (!%p315_p9), %926, %v364_v3   ;;  %v366_v8 = vld [vmem:[%s1220_s4] sm:$0xff] (!%p315_p9)  ;;  %v367_v9 = vld [vmem:[%s1220_s4 + $0x8] sm:$0xff] (!%p315_p9)  ;;  %879 = vmatprep.subr.bf16.mxu1 (!%p315_p9), %v1004_v11  ;;  %s1174_s30 = scalar_lea.hbm (!%p315_p9), %s1226_s10, %s844_s25  ;;  %s760_s12 = scalar_lea.sflag (!%p315_p9), [#allocation3], %s348_s21 }
  0x11   : > { %v363_v10 = vld [vmem:[%s1222_s6] sm:$0xff] (!%p315_p9)  ;;  %866 = vmatprep.mubr.msk.f32.mxu1 (!%p315_p9), %vm1005_vm1, %v1006_v12  ;;  %vm357_vm3 = vcmp.lt.s32.totalorder (!%p315_p9), %v356_v34, 64 }
  0x12   : > { %v360_v32 = vld [vmem:[%s1221_s5] sm:$0xff] (!%p315_p9) }
  0x13   : > { %376 = vperm.xlu0 (!%p315_p9), %925, %v362_v4   ;;  %v597_v53 = vld [vmem:[%s1223_s7] sm:$0xff] (!%p315_p9) }
  0x14   : > { %470 = vperm.xlu1 (!%p315_p9), %926, %v365_v5   ;;  %v598_v60 = vld [vmem:[%s1224_s8] sm:$0xff] (!%p315_p9) }
  0x15   : > { %s352_s11 = scalar_select %p351_p10, %s1084_s17, 1  ;;  %v745_v1 = vld [vmem:[%s1225_s9] sm:$0xff] }
  0x16   : > { %s1007_s17 = smov [#allocation2]  }
  0x17   : > { %s837_s20 = sshll.u32 %s352_s11, 3  ;;  %477 = vperm.xlu0 %925, %v366_v8   ;;  %s943_s11 = sshll.u32 %s1007_s17, 4  ;;  %s944_s11 = int_to_ptr.vmem [resolvable:$false] %s943_s11 }
  0x18   : > { %s354_s28 = scalar_lea.vmem %s1216_s0, %s837_s20  ;;  %482 = vperm.xlu1 %926, %v367_v9   ;;  %s836_s20 = sshll.u32 %s348_s21, 3 }
  0x19   : > { %v1132_v6 = vld [vmem:[%s354_s28] sm:$0xff]  ;;  %s350_s26 = scalar_lea.vmem [#allocation2], %s836_s20  ;;  %s945_s20 = scalar_lea.vmem %s944_s11, 256 }
  0x1a   : > { %857 = vmatprep.subr.mxu0 %v1132_v6  ;;  %s773_s27 = sshll.u32 %s350_s26, 4  ;;  %s1176_s27 = int_to_ptr.vmem [resolvable:$true] %s773_s27 }
  0x1b   : > { %858 = vmatpush3.msra.mxu0 %v1132_v6  ;;  %491 = vperm.xlu0 %925, %v363_v10   ;;  %s939_s18 = scalar_lea.vmem %s1176_s27, 128  ;;  %p946_p0 = scmp.lt.s32.totalorder %s1176_s27, %s944_s11 }
  0x1c   : > { %860 = vmatmul.mubr.msk.f32.vlgmr.msra.gmra.mrb[0].mxu0 %vm379_vm0, %v359_v7  ;;  %869 = vmatprep.subr.mxu0 %v1006_v12  ;;  %p940_p11 = scmp.ne.s32.totalorder %s1176_s27, %s939_s18  ;;  %p947_p1 = scmp.lt.s32.totalorder %s945_s20, %s939_s18 }
  0x1d   : > { %871 = vmatprep.mubr.msk.f32.mxu0 %vm1005_vm1, %v1006_v12 }
  0x1e   : > { %p941_p12 = pnand %p940_p11, %p1101_p5  ;;  %p948_p2 = por %p947_p1, %p946_p0 }
  0x20   : > { %p942_p13 = pneg %p941_p12 }
  0x22   : > { %p949_p3 = pnand %p948_p2, %p942_p13 }
  0x8e   : > { %v372_v13 = vpop.permute.xlu0 %371 }
  0x8f   : > { %v466_v14 = vpop.permute.xlu1 %465 }
  0x92   : > { %v377_v15 = vpop.permute.xlu0 %376 }
  0x93   : > { %v471_v16 = vpop.permute.xlu1 %470 }
  0x96   : > { %v478_v26 = vpop.permute.xlu0 %477 }
  0x97   : > { %v483_v24 = vpop.permute.xlu1 %482 }
  0x9a   : > { %v492_v35 = vpop.permute.xlu0 %491 }
  0xef   : > { %v861_v17 = vpop.f32.mrb[0].mxu0 }
  0xf0   : > { %v458_v18 = vadd.f32 %v861_v17, %v377_v15  ;;  %v452_v19 = vpop.f32.mrb[1].mxu0 }
  0xf1   : > { %v453_v20 = vadd.f32 %v452_v19, %v372_v13 }
  0xf2   : > { %v462_v21 = vmax.f32 %v458_v18, 0.0 }
  0xf3   : > { %v461_v22 = vmax.f32 %v453_v20, 0.0 }
  0xf4   : > { %v474_v23 = vmul.f32 %v471_v16, %v462_v21 }
  0xf5   : > { %v473_v25 = vmul.f32 %v466_v14, %v461_v22 }
  0xf6   : > { %v486_v27 = vadd.f32 %v483_v24, %v474_v23 }
  0xf7   : > { %v485_v28 = vadd.f32 %v478_v26, %v473_v25 }
  0xf8   : > { %927 = vtanh.f32 %v486_v27 }
  0xf9   : > { %929 = vtanh.f32 %v485_v28 }
 0x102   : > { %v928_v29 = vpop.eup %927 }
 0x103   : > { %v930_v30 = vpop.eup %929 }
 0x104   : > { %v880_v31 = vpack.c.bf16 %v928_v29, %v930_v30 }
 0x106   : > { %881 = vmatpush3.bf16.msra.mxu1 %v880_v31 }
 0x107   : > { %874 = vmatprep.subr.mxu1 %v1006_v12 }
 0x109   : > { %867 = vmatmul.mubr.msk.f32.vlgmr.msra.gmra.mrb[0].mxu1 %vm494_vm2, %v360_v32 }
 0x10a   : > { %876 = vmatprep.mubr.msk.f32.mxu1 %vm1005_vm1, %v1006_v12 }
 0x1dc   : > { %v564_v36 = vpop.f32.mrb[0].mxu1 }
 0x1dd   : > { %v565_v37 = vadd.f32 %v564_v36, %v492_v35  ;;  %v868_v38 = vpop.f32.mrb[1].mxu1 }
 0x1df   : > { %v570_v39 = vsel %vm357_vm3, %v565_v37, -1e+30 }
 0x1e0   : > { %571 = vmax.xlane.f32.xlu1 %v570_v39 }
 0x26d   : > { %v572_v40 = vpop.xlane.xlu1 %571 }
 0x26e   : > { %v573_v41 = vsub.f32 %v570_v39, %v572_v40 }
 0x270   : > { %v574_v42 = vmul.f32 1.442695, %v573_v41 }
 0x272   : > { %931 = vpow2.f32 %v574_v42 }
 0x27c   : > { %v932_v43 = vpop.eup %931 }
 0x27d   : > { %v576_v44 = vsel %vm357_vm3, %v932_v43, 0.0 }
 0x27e   : > { %577 = vadd.xlane.f32.xlu0 %v576_v44 }
 0x30b   : > { %v578_v45 = vpop.xlane.xlu0 %577 }
 0x30c   : > { %933 = vrcp.f32 %v578_v45 }
 0x316   : > { %v934_v46 = vpop.eup %933 }
 0x317   : > { %v580_v47 = vmul.f32 %v934_v46, %v576_v44 }
 0x319   : > { %v581_v48 = vmul.f32 %v580_v47, %v1132_v6 }
 0x31b   : > { %582 = vadd.xlane.f32.xlu0 %v581_v48 }
 0x3a8   : > { %v583_v49 = vpop.xlane.xlu0 %582 }
 0x3a9   : > { %v584_v50 = vsub.f32 %v1132_v6, %v583_v49  ;;  %875 = vmatpush3.msra.mxu1 %v583_v49 }
 0x3aa   : > { %877 = vmatmul.mubr.msk.f32.vlgmr.msra.gmra.mrb[2].mxu1 %vm379_vm0, %v597_v53 }
 0x3ab   : > { %v585_v51 = vmul.f32 %v584_v50, %v580_v47 }
 0x3ad   : > { %v586_v52 = vmul.f32 %v585_v51, %v584_v50 }
 0x3af   : > { %587 = vadd.xlane.f32.xlu1 %v586_v52 }
 0x43c   : > { %v588_v54 = vpop.xlane.xlu1 %587 }
 0x43d   : > { %v589_v55 = vmax.f32 %v588_v54, 1e-12 }
 0x43f   : > { %935 = vrsqrt.f32 %v589_v55  ;;  %vm592_vm4 = vcmp.eq.f32.partialorder %v589_v55, inf  ;;  %v595_v58 = vand.u32 2147483648, %v589_v55  ;;  %vm594_vm5 = vcmp.eq.f32.partialorder %v589_v55, 0.0 }
 0x449   : > { %v936_v56 = vpop.eup %935 }
 0x44a   : > { %v591_v57 = vmul.f32 %v936_v56, %v589_v55 }
 0x44c   : > { %v593_v59 = vsel %vm592_vm4, %v589_v55, %v591_v57 }
 0x44d   : > { %v596_v61 = vsel %vm594_vm5, %v595_v58, %v593_v59 }
 0x44e   : > { %870 = vmatpush3.msra.mxu0 %v596_v61 }
 0x44f   : > { %872 = vmatmul.mubr.msk.f32.vlgmr.msra.gmra.mrb[2].mxu0 %vm379_vm0, %v598_v60 }
 0x47d   : > { %v741_v62 = vpop.f32.mrb[2].mxu1 }
 0x47e   : > { %v878_v63 = vpop.f32.mrb[3].mxu1 }
 0x522   : > { %v668_v0 = vpop.f32.mrb[2].mxu0 }
 0x523   : > { %v742_v2 = vadd.f32 %v741_v62, %v668_v0  ;;  %v873_v3 = vpop.f32.mrb[3].mxu0 }
 0x525   : > { %v746_v4 = vadd.f32 %v745_v1, %v742_v2 }
 0x527   : > { %v748_v5 = vmul.f32 0.70710677, %v746_v4  ;;  %v747_v8 = vmul.f32 0.5, %v746_v4 }
 0x529   : > { %937 = verf.f32 %v748_v5 }
 0x533   : > { %v938_v7 = vpop.eup %937 }
 0x534   : > { %v750_v9 = vadd.f32 1.0, %v938_v7 }
 0x536   : > { %v751_v10 = vmul.f32 %v750_v9, %v747_v8 }
 0x538   : > { %754 = vperm.xlu0 %925, %v751_v10  }
 0x5b7   : > { %v755_v11 = vpop.permute.xlu0 %754 }
 0x5b8   : > { %v757_v12 = vmul.f32 %v755_v11, %v1132_v6 }
 0x5ba   : > { %758 = vst [vmem:[%s350_s26] sm:$0xff] %v757_v12 }
 0x5bb   : > { %952 = shalt.err (!%p949_p3)
}
 0x5bc   : > { %s953_s21 = scalar_lea.hbm %s1174_s30, 128  ;;  %s957_s28 = scalar_lea.hbm %s1226_s10, 256 }
 0x5bd   : > { %p954_p4 = scmp.ne.s32.totalorder %s1174_s30, %s953_s21  ;;  %p958_p9 = scmp.lt.u32.totalorder %s1174_s30, %s1226_s10 }
 0x5be   : > { %p959_p10 = scmp.lt.u32.totalorder %s957_s28, %s953_s21  ;;  %p961_p12 = scmp.lt.u32.totalorder %s953_s21, %s1174_s30 }
 0x5bf   : > { %p955_p7 = pnand %p954_p4, %p1101_p5 }
 0x5c0   : > { %p960_p11 = por %p959_p10, %p958_p9 }
 0x5c1   : > { %p956_p8 = pneg %p955_p7 }
 0x5c2   : > { %p962_p13 = por %p961_p12, %p960_p11 }
 0x5c4   : > { %p963_p0 = pnand %p962_p13, %p956_p8 }
 0x5c6   : > { %966 = shalt.err (!%p963_p0)
}
 0x5c7   : > { %882 = dma.vmem_to_hbm [thread:$0]  (%p1101_p5), %s1176_s27, 128, %s1174_s30, %s760_s12  }
 0x5c8 PF: > { %p888_p1 = scmp.ge.s32.totalorder %s1001_s16, 2  ;;  %s785_s18 = sand.u32 1, %s989_s13  }
 0x5c9   : > { %s786_s11 = scalar_lea.sflag [#allocation3], %s785_s18 }
 0x5ca   : > { %p885_p2 = pnand %p888_p1, %p1105_p6 }
 0x5cc   : > { %984 = dma.done.wait (!%p885_p2), %s786_s11, 128  }
 0x5cd   : > { %986 = vsyncadd (!%p885_p2), %s786_s11, 4294967168  ;;  %p20_p3 = scmp.ge.s32.totalorder %s1088_s19, 4   ;;  %s1229_s13 = smov %s993_s14 }
 0x5ce   : > { %s1230_s14 = smov %s997_s15  ;;  %s1231_s15 = smov %s1099_s22 }
 0x5cf   : > { %s1232_s16 = smov %s1088_s19  ;;  %22 = sbr.rel (!%p20_p3) target bundleno = 3 (0x3), region = 95 }
 0x5d6   :  { %791 = vsyncpa [#allocation3], 1 }
 0x5d7   :  { %793 = vsyncpa [#allocation3 + $0x1], 1 }

</bundles_post_ra>
